<compile_context>
chip_gen: v5e
topology: v5e:2x2
jax: 0.10.0
libtpu: 0.0.40
codegen_flags: <defaults>
</compile_context>

<pallas_src>
import numpy as np
import jax
import jax.numpy as jnp
from jax.experimental import pallas as pl
from jax.experimental.pallas import tpu as pltpu


def make_gaussian_kernel(ksize: int, sigma: float = 1.0) -> np.ndarray:
    """Deterministic 2D Gaussian kernel (K, K), normalized to sum to 1."""
    assert ksize % 2 == 1, "kernel size must be odd."
    ax = np.arange(ksize, dtype=np.float64) - (ksize - 1) / 2.0
    g1 = np.exp(-(ax ** 2) / (2.0 * sigma ** 2))
    k2 = np.outer(g1, g1)
    k2 = k2 / k2.sum()
    return k2.astype(np.float32)


def _round_up(v: int, m: int) -> int:
    return ((v + m - 1) // m) * m


def _make_blur_kernel(R: int):
    """Kernel body: one (H, W) plane -> one (Ho_pad, Wo_pad) blurred plane."""

    def kernel(a_ref, b_ref, x_ref, o_ref):
        # a_ref : VMEM (R, Ho_pad, H)       banded column-filter matrices (const)
        # b_ref : VMEM (R, W, Wo_pad)       banded row-filter matrices   (const)
        # x_ref : VMEM (1, 1, H, W)         one input plane
        # o_ref : VMEM (1, 1, Ho_pad, Wo_pad)
        x = x_ref[0, 0, :, :]
        acc = None
        for r in range(R):  # R == 1 for a true Gaussian (rank-1 kernel)
            t = jnp.dot(a_ref[r], x,
                        preferred_element_type=jnp.float32,
                        precision=jax.lax.Precision.HIGHEST)
            y = jnp.dot(t, b_ref[r],
                        preferred_element_type=jnp.float32,
                        precision=jax.lax.Precision.HIGHEST)
            acc = y if acc is None else acc + y
        o_ref[0, 0, :, :] = acc.astype(o_ref.dtype)

    return kernel


def gaussian_blur(x: jax.Array, kernel2d: np.ndarray) -> jax.Array:
    """x: (N, C>=3, H, W).  Returns (N, 3, H-K+1, W-K+1) float32 (valid conv)."""
    N, C, H, W = x.shape
    assert C >= 3, "forward uses channels 0, 1, 2"
    k2 = np.asarray(kernel2d, dtype=np.float64)
    K = k2.shape[0]
    assert k2.shape == (K, K) and K % 2 == 1
    Ho, Wo = H - K + 1, W - K + 1
    Ho_pad = _round_up(Ho, 8)      # sublane-dense output rows
    Wo_pad = _round_up(Wo, 128)    # lane-dense output cols -> unmasked stores

    # Separable decomposition of the 2D kernel (exact for a Gaussian: rank 1).
    # Non-separable kernels still work: each significant singular component
    # contributes one (A_r, B_r) matmul pair, so the result stays exact.
    U, S, Vt = np.linalg.svd(k2)
    keep = S > (S[0] * 1e-7)
    R = max(int(np.sum(keep)), 1)
    colf = U[:, :R] * np.sqrt(S[:R])            # (K, R) vertical filters
    rowf = np.sqrt(S[:R])[:, None] * Vt[:R, :]  # (R, K) horizontal filters

    # Banded matrices:  out[y, x] = sum_r (A_r @ x_plane @ B_r)[y, x]
    #                             = sum_{i,j} k2[i, j] * x[y+i, x+j]   (valid)
    A = np.zeros((R, Ho_pad, H), dtype=np.float32)
    B = np.zeros((R, W, Wo_pad), dtype=np.float32)
    ys = np.arange(Ho)
    xs = np.arange(Wo)
    for r in range(R):
        for i in range(K):
            A[r, ys, ys + i] = colf[i, r]
            B[r, xs + i, xs] = rowf[r, i]

    xf = x if x.dtype == jnp.float32 else x.astype(jnp.float32)

    out_pad = pl.pallas_call(
        _make_blur_kernel(R),
        out_shape=jax.ShapeDtypeStruct((N, 3, Ho_pad, Wo_pad), jnp.float32),
        grid=(N, 3),
        in_specs=[
            pl.BlockSpec((R, Ho_pad, H), lambda n, c: (0, 0, 0)),     # A (const)
            pl.BlockSpec((R, W, Wo_pad), lambda n, c: (0, 0, 0)),     # B (const)
            pl.BlockSpec((1, 1, H, W), lambda n, c: (n, c, 0, 0)),    # one plane
        ],
        out_specs=pl.BlockSpec((1, 1, Ho_pad, Wo_pad),
                               lambda n, c: (n, c, 0, 0)),
        compiler_params=pltpu.CompilerParams(
            dimension_semantics=("parallel", "parallel")),
    )(jnp.asarray(A), jnp.asarray(B), xf)

    # Crop the lane/sublane padding once, outside the kernel.
    return out_pad[:, :, :Ho, :Wo]


def _reference(x: np.ndarray, k2: np.ndarray) -> np.ndarray:
    """Pure-numpy reference matching F.conv2d (valid, cross-correlation)."""
    N, _, H, W = x.shape
    K = k2.shape[0]
    Ho, Wo = H - K + 1, W - K + 1
    out = np.zeros((N, 3, Ho, Wo), dtype=np.float32)
    for i in range(K):
        for j in range(K):
            out += k2[i, j] * x[:, :3, i:i + Ho, j:j + Wo]
    return out


if __name__ == "__main__":
    key = jax.random.PRNGKey(0)
    N, C, H, W = 2, 4, 16, 16          # C > 3: extra channel is ignored
    K = 3
    x = jax.random.normal(key, (N, C, H, W), dtype=jnp.float32)
    k2 = make_gaussian_kernel(K, sigma=1.0)

    y = gaussian_blur(x, k2)
    y = jax.block_until_ready(y)

    ref = _reference(np.asarray(x), k2)
    assert y.shape == (N, 3, H - K + 1, W - K + 1), y.shape
    np.testing.assert_allclose(np.asarray(y), ref, rtol=1e-4, atol=1e-5)
    print("KERNEL_OK")
</pallas_src>

<mosaic_0001>
module attributes {stable_mosaic.version = 11 : i64} {
  func.func @kernel(%arg0: i32, %arg1: i32, %arg2: memref<1x16x16xf32, #tpu.memory_space<vmem>>, %arg3: memref<1x16x128xf32, #tpu.memory_space<vmem>>, %arg4: memref<1x1x16x16xf32, #tpu.memory_space<vmem>>, %arg5: memref<1x1x16x128xf32, #tpu.memory_space<vmem>>) attributes {dimension_semantics = [#tpu.dimension_semantics<parallel>, #tpu.dimension_semantics<parallel>], iteration_bounds = array<i64: 2, 3>, scalar_prefetch = 0 : i64, scratch_operands = 0 : i64, tpu.core_type = #tpu.core_type<tc>, window_params = [{pipeline_mode = #tpu.pipeline_mode<synchronous>, transform_indices = @transform_0, window_bounds = array<i64: 1, 16, 16>}, {pipeline_mode = #tpu.pipeline_mode<synchronous>, transform_indices = @transform_1, window_bounds = array<i64: 1, 16, 128>}, {transform_indices = @transform_2, window_bounds = array<i64: 1, 1, 16, 16>}, {transform_indices = @transform_3, window_bounds = array<i64: 1, 1, 16, 128>}]} {
    %c0 = arith.constant 0 : index
    %c0_0 = arith.constant 0 : index
    %c0_1 = arith.constant 0 : index
    %c0_2 = arith.constant 0 : index
    %0 = vector.load %arg4[%c0, %c0_0, %c0_1, %c0_2] : memref<1x1x16x16xf32, #tpu.memory_space<vmem>>, vector<1x1x16x16xf32>
    %1 = vector.shape_cast %0 : vector<1x1x16x16xf32> to vector<16x16xf32>
    %c0_3 = arith.constant 0 : index
    %c0_4 = arith.constant 0 : index
    %c0_5 = arith.constant 0 : index
    %2 = vector.load %arg2[%c0_3, %c0_4, %c0_5] : memref<1x16x16xf32, #tpu.memory_space<vmem>>, vector<1x16x16xf32>
    %3 = vector.shape_cast %2 : vector<1x16x16xf32> to vector<16x16xf32>
    %cst = arith.constant dense<0.000000e+00> : vector<16x16xf32>
    %4 = tpu.matmul %3, %1, %cst {dimension_numbers = #tpu.dot_dimension_numbers<[1], [0], [0], [1], [0, 0, 1, 1], [], []>, precision = #tpu.contract_precision<fp32>} : vector<16x16xf32>, vector<16x16xf32>, vector<16x16xf32> -> vector<16x16xf32>
    %c0_6 = arith.constant 0 : index
    %c0_7 = arith.constant 0 : index
    %c0_8 = arith.constant 0 : index
    %5 = vector.load %arg3[%c0_6, %c0_7, %c0_8] : memref<1x16x128xf32, #tpu.memory_space<vmem>>, vector<1x16x128xf32>
    %6 = vector.shape_cast %5 : vector<1x16x128xf32> to vector<16x128xf32>
    %cst_9 = arith.constant dense<0.000000e+00> : vector<16x128xf32>
    %7 = tpu.matmul %4, %6, %cst_9 {dimension_numbers = #tpu.dot_dimension_numbers<[1], [0], [0], [1], [0, 0, 1, 1], [], []>, precision = #tpu.contract_precision<fp32>} : vector<16x16xf32>, vector<16x128xf32>, vector<16x128xf32> -> vector<16x128xf32>
    %c0_10 = arith.constant 0 : index
    %c0_11 = arith.constant 0 : index
    %c0_12 = arith.constant 0 : index
    %c0_13 = arith.constant 0 : index
    %8 = vector.load %arg5[%c0_10, %c0_11, %c0_12, %c0_13] : memref<1x1x16x128xf32, #tpu.memory_space<vmem>>, vector<1x1x16x128xf32>
    %9 = vector.shape_cast %8 : vector<1x1x16x128xf32> to vector<16x128xf32>
    %10 = vector.shape_cast %7 : vector<16x128xf32> to vector<1x1x16x128xf32>
    tpu.vector_store %arg5[%c0_10, %c0_11, %c0_12, %c0_13], %10 {strides = array<i32>} : memref<1x1x16x128xf32, #tpu.memory_space<vmem>>, vector<1x1x16x128xf32>,
    return
  }
  func.func @transform_0(%arg0: i32, %arg1: i32) -> (i32, i32, i32) {
    %c0_i32 = arith.constant 0 : i32
    %c0_i32_0 = arith.constant 0 : i32
    %c0_i32_1 = arith.constant 0 : i32
    %c0_i32_2 = arith.constant 0 : i32
    return %c0_i32, %c0_i32_0, %c0_i32_1 : i32, i32, i32
  }
  func.func @transform_1(%arg0: i32, %arg1: i32) -> (i32, i32, i32) {
    %c0_i32 = arith.constant 0 : i32
    %c0_i32_0 = arith.constant 0 : i32
    %c0_i32_1 = arith.constant 0 : i32
    %c0_i32_2 = arith.constant 0 : i32
    return %c0_i32, %c0_i32_0, %c0_i32_1 : i32, i32, i32
  }
  func.func @transform_2(%arg0: i32, %arg1: i32) -> (i32, i32, i32, i32) {
    %c0_i32 = arith.constant 0 : i32
    %c0_i32_0 = arith.constant 0 : i32
    %c0_i32_1 = arith.constant 0 : i32
    return %arg0, %arg1, %c0_i32, %c0_i32_0 : i32, i32, i32, i32
  }
  func.func @transform_3(%arg0: i32, %arg1: i32) -> (i32, i32, i32, i32) {
    %c0_i32 = arith.constant 0 : i32
    %c0_i32_0 = arith.constant 0 : i32
    %c0_i32_1 = arith.constant 0 : i32
    return %arg0, %arg1, %c0_i32, %c0_i32_0 : i32, i32, i32, i32
  }
}

</mosaic_0001>

<bundles_post_ra>
// kernel: tpu_custom_call.1
= control target key start
LH: loop header
LB: loop body
LE: loop exit
PB: predicated region body
PF: predicated region fallthrough
CT: control target
= control target key end

     0   :  { %s1308_s0 = inlined_call_operand.hbm [shape: f32[1,16,16], index: 0, kind: input, shape index: {}]   ;;  %s1309_s1 = inlined_call_operand.hbm [shape: f32[1,16,128], index: 1, kind: input, shape index: {}]   ;;  %s1310_s2 = inlined_call_operand.hbm [shape: f32[2,4,16,16], index: 2, kind: input, shape index: {}]   ;;  %s1311_s3 = inlined_call_operand.hbm [shape: f32[2,3,16,128], index: 3, kind: output, shape index: {}]  }
   0x1   :  { %1320 = sst [smem:[#allocation18_spill]] %s1308_s0 }
   0x2   :  { %1321 = sst [smem:[#allocation19_spill]] %s1309_s1 }
   0x3   :  { %8 = vsyncpa [#allocation3], 0 }
   0x4   :  { %9 = vsyncpa [#allocation6], 0 }
   0x5   :  { %10 = vsyncpa [#allocation4], 0 }
   0x6   :  { %12 = vsyncpa [#allocation4 + $0x1], 0  ;;  %s1116_s12 = smov 0   ;;  %s1118_s13 = smov 0  }
   0x7   :  { %s1120_s14 = smov 0   ;;  %s1122_s15 = smov 0  }
   0x8   :  { %s1124_s16 = smov 0   ;;  %s1126_s17 = smov 0  }
   0x9   :  { %s1128_s18 = smov 0   ;;  %s1130_s19 = smov 0  }
   0xa LB: > { %1322 = sst [smem:[#allocation13_spill]] %s1060_s12  ;;  %s1157_s20 = sadd.s32 4294967295, %s1088_s19   ;;  %s1088_s19 = sphi %s1130_s19, %s18_s19   ;;  %s1084_s18 = sphi %s1128_s18, %s1347_s18   ;;  %s1080_s17 = sphi %s1126_s17, %s1346_s17   ;;  %s1076_s16 = sphi %s1124_s16, %s1345_s16   ;;  %s1072_s15 = sphi %s1122_s15, %s1344_s15   ;;  %s1068_s14 = sphi %s1120_s14, %s1343_s14   ;;  %s1064_s13 = sphi %s1118_s13, %s1342_s13   ;;  %s1060_s12 = sphi %s1116_s12, %s1341_s12  }
   0xb   : > { %s769_s21 = sadd.s32 4294967294, %s1088_s19   ;;  %p94_p0 = scmp.ne.s32.totalorder %s1064_s13, %s1060_s12 }
   0xc   : > { %p95_p1 = scmp.eq.s32.totalorder %s1157_s20, 0  ;;  %p126_p2 = scmp.eq.s32.totalorder %s769_s21, 5 }
   0xd   : > { %p770_p4 = scmp.ge.s32.totalorder %s1088_s19, 1  ;;  %p133_p6 = scmp.lt.s32.totalorder %s1088_s19, 7 }
   0xe   : > { %p1165_p3 = por %p95_p1, %p94_p0  ;;  %p1170_p5 = por %p126_p2, %p94_p0 }
   0xf   : > { %s1326_s0 = sld [smem:[#allocation18_spill]]  ;;  %p1178_p7 = pnand %p770_p4, %p133_p6 }
  0x10   : > { %s1324_s23 = scalar_select %p1170_p5, 1, 0 }
  0x11   : > { %p801_p8 = pneg %p1178_p7  ;;  %s1090_s28 = smov [#allocation2]  }
  0x12   : > { %1325 = sst [smem:[#allocation14_spill]] %s1324_s23  ;;  %s146_s29 = sshll.u32 %s1090_s28, 4  ;;  %s147_s29 = int_to_ptr.vmem [resolvable:$true] %s146_s29 }
  0x13   : > { %p802_p9 = pnand %p801_p8, %p95_p1  ;;  %s1328_s1 = sld [smem:[#allocation19_spill]] }
  0x14   : > { %s1312_s6 = smov 128   ;;  %s1313_s7 = smov 8  }
  0x15   : > { %s144_s26 = sshll.u32 %s1326_s0, 4  ;;  %s1093_s8 = smov [#allocation5]   ;;  %s145_s26 = int_to_ptr.hbm [resolvable:$true] %s144_s26 }
  0x16   : > { %804 = dma.hbm_to_vmem [thread:$0]  (!%p802_p9), %s145_s26, 256, %s147_s29, [#allocation3], %s1312_s6, %s1312_s6, %s1313_s7  }
  0x17   : > { %s160_s9 = sshll.u32 %s1093_s8, 4  ;;  %p120_p10 = scmp.eq.s32.totalorder %s1157_s20, 5  ;;  %s161_s9 = int_to_ptr.vmem [resolvable:$true] %s160_s9 }
  0x18   : > { %s27_s10 = sadd.s32 1, %s1080_s17  ;;  %s30_s11 = sadd.s32 1, %s1084_s18 }
  0x19   : > { %s158_s5 = sshll.u32 %s1328_s1, 4  ;;  %p28_p11 = scmp.ge.s32.totalorder %s27_s10, 3  ;;  %s159_s5 = int_to_ptr.hbm [resolvable:$true] %s158_s5 }
  0x1a   : > { %807 = dma.hbm_to_vmem [thread:$0]  (!%p802_p9), %s159_s5, 256, %s161_s9, [#allocation6], %s1312_s6, %s1312_s6, %s1313_s7  }
  0x1b   : > { %p88_p12 = scmp.ne.s32.totalorder %s1068_s14, %s1064_s13  ;;  %p89_p13 = scmp.eq.s32.totalorder %s1088_s19, 0 }
  0x1c   : > { %s1349_s10 = smov (%p28_p11, %s27_s10), 0  ;;  %s1351_s11 = smov (!%p28_p11, %s30_s11), %s1084_s18 }
  0x1d   : > { %1329 = sst [smem:[#allocation15_spill]] %s1349_s10  ;;  %s77_s21 = ssub.s32 %s1080_s17, %s1349_s10 }
  0x1e   : > { %s81_s24 = sadd.s32 1, %s1068_s14  ;;  %p32_p0 = scmp.ge.s32.totalorder %s1351_s11, 2 }
  0x1f   : > { %p1207_p2 = por %p120_p10, %p88_p12  ;;  %p1211_p4 = por %p89_p13, %p88_p12 }
  0x20   : > { %p818_p6 = scmp.lt.s32.totalorder %s1088_s19, 6  ;;  %s1353_s11 = smov (%p32_p0, %s1351_s11), 0 }
  0x21   : > { %s1330_s25 = scalar_select %p1207_p2, 1, 0 }
  0x22   : > { %1333 = sst [smem:[#allocation17_spill]] %s1353_s11  ;;  %s174_s28 = sand.u32 1, %s1088_s19  }
  0x23   : > { %1331 = sst [smem:[#allocation16_spill]] %s1330_s25  ;;  %s176_s29 = sand.u32 1, %s1068_s14  }
  0x24   : > { %s76_s30 = ssub.s32 %s1084_s18, %s1353_s11  ;;  %s774_s4 = sshll.u32 %s176_s29, 4 }
  0x25   : > { %s78_s5 = sor.u32 %s77_s21, %s76_s30  ;;  %s775_s8 = sshll.u32 %s1080_s17, 1 }
  0x26   : > { %p79_p8 = scmp.eq.s32.totalorder %s78_s5, 0  ;;  %s776_s9 = sshll.u32 %s1084_s18, 3 }
  0x27   : > { %s178_s6 = scalar_lea.vmem [#allocation7], %s774_s4  ;;  %s183_s1 = sadd.s32 %s776_s9, %s775_s8 }
  0x28   : > { %s188_s7 = sshll.u32 %s178_s6, 4  ;;  %s777_s10 = sshll.u32 %s183_s1, 3  ;;  %s189_s7 = int_to_ptr.vmem [resolvable:$true] %s188_s7 }
  0x29   : > { %s1225_s0 = scalar_select %p79_p8, %s1068_s14, %s81_s24  }
  0x2a   : > { %p809_p9 = pnand %p818_p6, %p1211_p4  ;;  %s185_s25 = scalar_lea.hbm %s1310_s2, %s777_s10 }
  0x2b   : > { %s186_s11 = sshll.u32 %s185_s25, 4  ;;  %s175_s21 = scalar_lea.sflag [#allocation3], %s174_s28  ;;  %s187_s11 = int_to_ptr.hbm [resolvable:$true] %s186_s11 }
  0x2c   : > { %s1334_s29 = smov 8   ;;  %s1335_s30 = smov 128  }
  0x2d   : > { %811 = dma.hbm_to_vmem [thread:$0]  (!%p809_p9), %s187_s11, 256, %s189_s7, %s175_s21, %s1335_s30, %s1335_s30, %s1334_s29  }
  0x2e   : > { %200 = sbr.rel (%p1178_p7) target bundleno = 392 (0x188), region = 32 }
  0x33   : > { %1043 = dma.done.wait (%p95_p1), [#allocation3], 256  }
  0x34   : > { %1045 = vsyncadd (%p95_p1), [#allocation3], 4294967040 }
  0x35   : > { %1047 = dma.done.wait (%p95_p1), [#allocation6], 256  }
  0x36   : > { %1049 = vsyncadd (%p95_p1), [#allocation6], 4294967040  ;;  %s212_s1 = sand.u32 1, %s1157_s20   ;;  %s214_s12 = sand.u32 1, %s1064_s13  }
  0x37   : > { %s1251_s23 = sshll.u32 %s214_s12, 4  ;;  %s213_s27 = scalar_lea.sflag [#allocation3], %s212_s1 }
  0x38   : > { %s216_s6 = scalar_lea.vmem [#allocation7], %s1251_s23 }
  0x39   : > { %1051 = dma.done.wait (%p1165_p3), %s213_s27, 256  }
  0x3a   : > { %1053 = vsyncadd (%p1165_p3), %s213_s27, 4294967040  ;;  %vm244_vm0 = vcmask 130048   ;;  %v241_v0 = vld [vmem:[%s216_s6 + $0x8] sm:$0xff]  ;;  %v240_v1 = vld [vmem:[%s216_s6] sm:$0xff]  ;;  %s788_s20 = smul.u32 6, %s1076_s16  ;;  %s784_s22 = sshll.u32 %s1072_s15, 1 }
  0x3b   : > { %v242_v2 = vld [vmem:[#allocation2] sm:$0xff]  ;;  %v265_v3 = vand.u32 4294901760, %v241_v0  ;;  %v267_v4 = vand.u32 4294901760, %v240_v1  ;;  %v243_v6 = vld [vmem:[#allocation2 + $0x8] sm:$0xff]  ;;  %v442_v26 = vld [vmem:[#allocation5 + $0x8] sm:$0xff]  ;;  %s239_s26 = scalar_lea.vmem [#allocation8], %s1251_s23 }
  0x3c   : > { %v246_v5 = vsel %vm244_vm0, %v242_v2, 0  ;;  %v249_v8 = vsel %vm244_vm0, %v243_v6, 0  ;;  %v463_v27 = vand.u32 4294901760, %v442_v26  ;;  %v441_v28 = vld [vmem:[#allocation5] sm:$0xff]  ;;  %s653_s7 = sadd.s32 %s788_s20, %s784_s22  ;;  %s656_s16 = sshll.u32 %s239_s26, 4  ;;  %s657_s16 = int_to_ptr.vmem [resolvable:$true] %s656_s16 }
  0x3d   : > { %v269_v7 = vand.u32 4294901760, %v246_v5  ;;  %v301_v9 = vsub.f32 %v241_v0, %v265_v3  ;;  %266 = vmatpush.msra.mxu0 %v265_v3  ;;  %v307_v10 = vsub.f32 %v240_v1, %v267_v4  ;;  %367 = vmatpush.msra.mxu3 %v265_v3  ;;  %v277_v11 = vand.u32 4294901760, %v249_v8  ;;  %s785_s10 = sshll.u32 %s653_s7, 3  ;;  %s642_s4 = scalar_lea.sflag [#allocation4], %s214_s12 }
  0x3e   : > { %v499_v29 = vsub.f32 %v442_v26, %v463_v27  ;;  %v465_v30 = vand.u32 4294901760, %v441_v28  ;;  %s655_s25 = scalar_lea.hbm %s1311_s3, %s785_s10  ;;  %s1002_s29 = scalar_lea.hbm %s1311_s3, 96 }
  0x3f   : > { %v270_v12 = vsub.f32 %v246_v5, %v269_v7  ;;  %337 = vmatpush.msra.mxu2 %v301_v9  ;;  %268 = vmatpush.msra.mxu0 %v267_v4  ;;  %v302_v13 = vand.u32 4294901760, %v301_v9  ;;  %v308_v14 = vand.u32 4294901760, %v307_v10  ;;  %v278_v15 = vsub.f32 %v249_v8, %v277_v11  ;;  %s658_s28 = sshll.u32 %s655_s25, 4  ;;  %s659_s28 = int_to_ptr.hbm [resolvable:$true] %s658_s28 }
  0x40   : > { %369 = vmatpush.msra.mxu3 %v267_v4  ;;  %v500_v31 = vand.u32 4294901760, %v499_v29  ;;  %v505_v32 = vsub.f32 %v441_v28, %v465_v30  ;;  %s996_s5 = sshra.s32 %s659_s28, 4  ;;  %s997_s5 = int_to_ptr.hbm [resolvable:$true] %s996_s5 }
  0x41   : > { %v271_v16 = vand.u32 4294901760, %v270_v12  ;;  %340 = vmatpush.msra.mxu2 %v307_v10  ;;  %v303_v17 = vsub.f32 %v301_v9, %v302_v13  ;;  %400 = vmatpush.msrb.mxu0 %v302_v13  ;;  %v309_v18 = vsub.f32 %v307_v10, %v308_v14  ;;  %v279_v20 = vand.u32 4294901760, %v278_v15  ;;  %s998_s8 = scalar_lea.hbm %s997_s5, 16  ;;  %p1003_p10 = scmp.lt.s32.totalorder %s997_s5, %s1311_s3 }
  0x42   : > { %343 = vmatmul.f32.vlgmr.msra.gmra.mxu2 %v270_v12  ;;  %v501_v33 = vsub.f32 %v499_v29, %v500_v31  ;;  %v506_v34 = vand.u32 4294901760, %v505_v32  ;;  %p999_p1 = scmp.ne.s32.totalorder %s997_s5, %s998_s8  ;;  %p1004_p11 = scmp.lt.s32.totalorder %s1002_s29, %s998_s8 }
  0x43   : > { %v272_v19 = vsub.f32 %v270_v12, %v271_v16  ;;  %373 = vmatmul.f32.vlgmr.msra.gmra.mxu3 %v271_v16  ;;  %v304_v21 = vand.u32 4294901760, %v303_v17  ;;  %v310_v22 = vand.u32 4294901760, %v309_v18  ;;  %404 = vmatpush.msrb.mxu0 %v308_v14  ;;  %v280_v24 = vsub.f32 %v278_v15, %v279_v20 }
  0x44   : > { %464 = vmatpush.msrb.mxu2 %v463_v27  ;;  %v502_v35 = vand.u32 4294901760, %v501_v33  ;;  %v507_v36 = vsub.f32 %v505_v32, %v506_v34  ;;  %p1000_p3 = pnand %p999_p1, %p1207_p2  ;;  %p1005_p12 = por %p1004_p11, %p1003_p10 }
  0x45   : > { %v273_v23 = vand.u32 4294901760, %v272_v19  ;;  %305 = vmatpush.msra.mxu1 %v304_v21  ;;  %v281_v25 = vand.u32 4294901760, %v280_v24 }
  0x46   : > { %466 = vmatpush.msrb.mxu2 %v465_v30  ;;  %503 = vmatpush.msrb.mxu3 %v502_v35  ;;  %v508_v37 = vand.u32 4294901760, %v507_v36  ;;  %p1001_p7 = pneg %p1000_p3 }
  0x47   : > { %274 = vmatmul.f32.vlgmr.msra.gmra.mxu0 %v273_v23  ;;  %311 = vmatpush.msra.mxu1 %v310_v22 }
  0x48   : > { %313 = vmatmul.f32.vlgmr.msra.gmra.mxu1 %v269_v7  ;;  %535 = vmatpush.msra.mxu0 %v499_v29  ;;  %p1006_p13 = pnand %p1005_p12, %p1001_p7 }
  0x49   : > { %429 = vmatpush.msrb.mxu1 %v265_v3  ;;  %598 = vmatpush.msra.mxu2 %v500_v31 }
  0x4a   : > { %348 = vmatmul.f32.gmra.mxu2 %v278_v15  ;;  %538 = vmatpush.msra.mxu0 %v505_v32 }
  0x4b   : > { %379 = vmatmul.f32.gmra.mxu3 %v279_v20  ;;  %431 = vmatpush.msrb.mxu1 %v267_v4 }
  0x4c   : > { %602 = vmatpush.msra.mxu2 %v506_v34  ;;  %509 = vmatpush.msrb.mxu3 %v508_v37 }
  0x4d   : > { %565 = vmatpush.msra.mxu1 %v463_v27 }
  0x4e   : > { %627 = vmatpush.msra.mxu3 %v463_v27 }
  0x4f   : > { %282 = vmatmul.f32.gmra.mxu0 %v281_v25  ;;  %567 = vmatpush.msra.mxu1 %v465_v30 }
  0x50   : > { %317 = vmatmul.f32.gmra.mxu1 %v277_v11  ;;  %629 = vmatpush.msra.mxu3 %v465_v30 }
  0x57   : > { %406 = vmatmul.f32.vlgmr.msrb.gmra.mxu0 %v269_v7 }
  0x58   : > { %433 = vmatmul.f32.vlgmr.msrb.gmra.mxu1 %v269_v7 }
  0x5f   : > { %410 = vmatmul.f32.gmra.mxu0 %v277_v11 }
  0x60   : > { %437 = vmatmul.f32.gmra.mxu1 %v277_v11 }
  0xc4   : > { %v275_v38 = vpop.f32.mrf.mxu0 }
  0xc5   : > { %v314_v39 = vpop.f32.mrf.mxu1  ;;  %v344_v40 = vpop.f32.mrf.mxu2 }
  0xc6   : > { %v315_v41 = vadd.f32 %v314_v39, %v275_v38  ;;  %v374_v43 = vpop.f32.mrf.mxu3 }
  0xc8   : > { %v345_v45 = vadd.f32 %v344_v40, %v315_v41 }
  0xca   : > { %v375_v46 = vadd.f32 %v374_v43, %v345_v45 }
  0xcc   : > { %v283_v42 = vpop.f32.mrf.mxu0 }
  0xcd   : > { %v318_v44 = vpop.f32.mrf.mxu1  ;;  %v349_v48 = vpop.f32.mrf.mxu2 }
  0xce   : > { %v319_v47 = vadd.f32 %v318_v44, %v283_v42  ;;  %v380_v54 = vpop.f32.mrf.mxu3 }
  0xd0   : > { %v350_v52 = vadd.f32 %v349_v48, %v319_v47 }
  0xd2   : > { %v381_v57 = vadd.f32 %v380_v54, %v350_v52 }
  0xd4   : > { %v407_v49 = vpop.f32.mrf.mxu0 }
  0xd5   : > { %v408_v50 = vadd.f32 %v407_v49, %v375_v46  ;;  %v434_v51 = vpop.f32.mrf.mxu1 }
  0xd7   : > { %v435_v53 = vadd.f32 %v434_v51, %v408_v50 }
  0xd9   : > { %v444_v55 = vsel %vm244_vm0, %v435_v53, 0 }
  0xda   : > { %v467_v56 = vand.u32 4294901760, %v444_v55 }
  0xdc   : > { %v468_v58 = vsub.f32 %v444_v55, %v467_v56  ;;  %v411_v59 = vpop.f32.mrf.mxu0  ;;  %511 = vmatmul.f32.vlgmr.msrb.gmra.mxu3 %v467_v56 }
  0xdd   : > { %v412_v60 = vadd.f32 %v411_v59, %v381_v57  ;;  %v438_v61 = vpop.f32.mrf.mxu1 }
  0xde   : > { %541 = vmatmul.f32.vlgmr.msra.gmra.mxu0 %v468_v58  ;;  %v469_v62 = vand.u32 4294901760, %v468_v58 }
  0xdf   : > { %v439_v63 = vadd.f32 %v438_v61, %v412_v60 }
  0xe0   : > { %571 = vmatmul.f32.vlgmr.msra.gmra.mxu1 %v469_v62  ;;  %v470_v0 = vsub.f32 %v468_v58, %v469_v62 }
  0xe1   : > { %v447_v1 = vsel %vm244_vm0, %v439_v63, 0 }
  0xe2   : > { %v475_v2 = vand.u32 4294901760, %v447_v1  ;;  %v471_v3 = vand.u32 4294901760, %v470_v0 }
  0xe4   : > { %v476_v4 = vsub.f32 %v447_v1, %v475_v2  ;;  %472 = vmatmul.f32.vlgmr.msrb.gmra.mxu2 %v471_v3  ;;  %515 = vmatmul.f32.gmra.mxu3 %v475_v2 }
  0xe6   : > { %546 = vmatmul.f32.gmra.mxu0 %v476_v4  ;;  %v477_v5 = vand.u32 4294901760, %v476_v4 }
  0xe8   : > { %577 = vmatmul.f32.gmra.mxu1 %v477_v5  ;;  %v478_v6 = vsub.f32 %v476_v4, %v477_v5 }
  0xea   : > { %v479_v7 = vand.u32 4294901760, %v478_v6 }
  0xec   : > { %480 = vmatmul.f32.gmra.mxu2 %v479_v7  ;;  %631 = vmatmul.f32.vlgmr.msra.gmra.mxu3 %v467_v56 }
  0xf4   : > { %604 = vmatmul.f32.vlgmr.msra.gmra.mxu2 %v467_v56  ;;  %635 = vmatmul.f32.gmra.mxu3 %v475_v2 }
  0xfc   : > { %608 = vmatmul.f32.gmra.mxu2 %v475_v2 }
 0x15b   : > { %v542_v12 = vpop.f32.mrf.mxu0 }
 0x15d   : > { %v572_v15 = vpop.f32.mrf.mxu1 }
 0x15f   : > { %v512_v8 = vpop.f32.mrf.mxu3 }
 0x163   : > { %v547_v21 = vpop.f32.mrf.mxu0 }
 0x165   : > { %v578_v24 = vpop.f32.mrf.mxu1 }
 0x167   : > { %v473_v9 = vpop.f32.mrf.mxu2  ;;  %v516_v10 = vpop.f32.mrf.mxu3 }
 0x168   : > { %v513_v11 = vadd.f32 %v512_v8, %v473_v9 }
 0x16a   : > { %v543_v14 = vadd.f32 %v542_v12, %v513_v11 }
 0x16c   : > { %v573_v17 = vadd.f32 %v572_v15, %v543_v14 }
 0x16f   : > { %v481_v13 = vpop.f32.mrf.mxu2  ;;  %v632_v18 = vpop.f32.mrf.mxu3 }
 0x170   : > { %v517_v16 = vadd.f32 %v516_v10, %v481_v13 }
 0x172   : > { %v548_v22 = vadd.f32 %v547_v21, %v517_v16 }
 0x174   : > { %v579_v25 = vadd.f32 %v578_v24, %v548_v22 }
 0x177   : > { %v605_v19 = vpop.f32.mrf.mxu2  ;;  %v636_v28 = vpop.f32.mrf.mxu3 }
 0x178   : > { %v606_v20 = vadd.f32 %v605_v19, %v573_v17 }
 0x17a   : > { %v633_v23 = vadd.f32 %v632_v18, %v606_v20 }
 0x17c   : > { %639 = vst [vmem:[%s239_s26] sm:$0xff] %v633_v23 }
 0x17f   : > { %v609_v26 = vpop.f32.mrf.mxu2 }
 0x180   : > { %v610_v27 = vadd.f32 %v609_v26, %v579_v25 }
 0x182   : > { %v637_v29 = vadd.f32 %v636_v28, %v610_v27 }
 0x184   : > { %640 = vst [vmem:[%s239_s26 + $0x8] sm:$0xff] %v637_v29 }
 0x185   : > { %1009 = shalt.err (!%p1006_p13)
}
 0x186   : > { %s1094_s12 = smov 128   ;;  %s1095_s23 = smov 8  }
 0x187   : > { %799 = dma.vmem_to_hbm [thread:$0]  (%p1207_p2), %s657_s16, 256, %s659_s28, %s642_s4, %s1094_s12, %s1094_s12, %s1095_s23  }
 0x188 PF: > { %s1337_s27 = sld [smem:[#allocation13_spill]]  ;;  %p821_p0 = scmp.ge.s32.totalorder %s1088_s19, 2 }
 0x18a   : > { %p813_p4 = pnand %p821_p0, %p1170_p5 }
 0x18c   : > { %p814_p6 = pneg %p813_p4 }
 0x18e   : > { %s673_s20 = sand.u32 1, %s1337_s27  }
 0x18f   : > { %s674_s22 = scalar_lea.sflag [#allocation4], %s673_s20 }
 0x190   : > { %1055 = dma.done.wait (%p814_p6), %s674_s22, 256  }
 0x191   : > { %1057 = vsyncadd (%p814_p6), %s674_s22, 4294967040  ;;  %s18_s19 = sadd.s32 1, %s1088_s19   ;;  %s1339_s7 = sld [smem:[#allocation15_spill]] }
 0x192   : > { %p15_p8 = scmp.ge.s32.totalorder %s18_s19, 8   ;;  %s1340_s10 = sld [smem:[#allocation17_spill]] }
 0x193   : > { %s1341_s12 = smov %s1064_s13  ;;  %s1342_s13 = smov %s1068_s14 }
 0x194   : > { %s1343_s14 = smov %s1225_s0  ;;  %s1344_s15 = smov %s1080_s17 }
 0x195   : > { %s1345_s16 = smov %s1084_s18  ;;  %17 = sbr.rel (!%p15_p8) target bundleno = 10 (0xa), region = 84 }
 0x197   : > { %s1346_s17 = smov %s1339_s7 }
 0x198   : > { %s1347_s18 = smov %s1340_s10 }
 0x19a   :  { %680 = vsyncpa [#allocation3], 1 }
 0x19b   :  { %682 = vsyncpa [#allocation3 + $0x1], 1 }
 0x19c   :  { %683 = vsyncpa [#allocation6], 1 }
 0x19d   :  { %684 = vsyncpa [#allocation4], 1 }
 0x19e   :  { %686 = vsyncpa [#allocation4 + $0x1], 1 }

</bundles_post_ra>
